<compile_context>
chip_gen: v5e
topology: v5e:2x2
jax: 0.10.0
libtpu: 0.0.40
codegen_flags: <defaults>
</compile_context>

<pallas_src>
import jax
import jax.numpy as jnp
from jax import lax
from jax.experimental import pallas as pl
from jax.experimental.pallas import tpu as pltpu


# ---------------------------------------------------------------------------
# Fused kernel: text branch (conv1 -> cp -> conv3) + image branch
#               (conv2 -> sp -> conv4), output written pre-concatenated.
# One grid step == one batch element (blocks carry a leading batch dim of 1).
# ---------------------------------------------------------------------------
def _mma_fused_kernel(gam_ref, xt_ref, xi_ref,
                      w1_ref, b1_ref, w3_ref, b3_ref,
                      w2_ref, b2_ref,
                      wq_ref, bq_ref, wk_ref, bk_ref, wv_ref, bv_ref,
                      w4_ref, b4_ref, o_ref):
    f32 = jnp.float32

    def conv3_bn_relu(x, w_ref, b_ref):
        # x: (B, L, Ci) channels-last.  w_ref: (Ci, 3*Co) = [W0|W1|W2] with the BN
        # scale folded in.  b_ref: (1, 1, Co) = folded BN shift.
        # padding=1 halo: y[l] = z0[l-1] + z1[l] + z2[l+1] via sublane shifts.
        bsz, L, ci = x.shape
        co = b_ref.shape[-1]
        z = jnp.dot(x.reshape(bsz * L, ci), w_ref[...],
                    preferred_element_type=f32).reshape(bsz, L, 3 * co)
        z0 = z[:, :, 0:co]            # tap k=0  -> pairs with x[l-1]
        z1 = z[:, :, co:2 * co]       # tap k=1  -> x[l]
        z2 = z[:, :, 2 * co:3 * co]   # tap k=2  -> x[l+1]
        zero_row = jnp.zeros((bsz, 1, co), f32)
        y = (jnp.concatenate([zero_row, z0[:, :L - 1, :]], axis=1)   # shift down
             + z1
             + jnp.concatenate([z2[:, 1:, :], zero_row], axis=1))    # shift up
        return jnp.maximum(y + b_ref[...], 0.0)

    def proj_1x1(x, w_ref, b_ref):
        # 1x1 conv, channels-last: (B*L, Ci) @ (Ci, Co) + b
        bsz, L, ci = x.shape
        co = b_ref.shape[-1]
        y = jnp.dot(x.reshape(bsz * L, ci), w_ref[...],
                    preferred_element_type=f32).reshape(bsz, L, co)
        return y + b_ref[...]

    def softmax_last(a):
        a = a - jnp.max(a, axis=-1, keepdims=True)
        e = jnp.exp(a)
        return e * pl.reciprocal(jnp.sum(e, axis=-1, keepdims=True), approx=True)

    # ------------------ text branch: conv1 -> ChannelProjection -> conv3 -----
    xt = xt_ref[...].astype(f32)                                  # (1, Lt, Cin)
    lt = xt.shape[1]
    h1 = conv3_bn_relu(xt, w1_ref, b1_ref)                        # (1, Lt, mid)
    h1_t = jnp.swapaxes(h1, 1, 2)                                 # (1, mid, Lt)
    att_c = jnp.einsum('bcl,bdl->bcd', h1_t, h1_t,
                       preferred_element_type=f32)                # (1, mid, mid)
    sc_c = softmax_last(att_c)
    out_c = jnp.einsum('bld,bcd->blc', h1, sc_c,
                       preferred_element_type=f32)                # (1, Lt, mid)
    t_feat = gam_ref[0, 0] * out_c + h1
    t_out = conv3_bn_relu(t_feat, w3_ref, b3_ref)                 # (1, Lt, Cout)

    # ------------------ image branch: conv2 -> SpaceProjection -> conv4 ------
    xi = xi_ref[...].astype(f32)                                  # (1, Li, Cin)
    li = xi.shape[1]
    h2 = conv3_bn_relu(xi, w2_ref, b2_ref)                        # (1, Li, mid)
    q = proj_1x1(h2, wq_ref, bq_ref)                              # (1, Li, c8)
    k = proj_1x1(h2, wk_ref, bk_ref)                              # (1, Li, c8)
    v = proj_1x1(h2, wv_ref, bv_ref)                              # (1, Li, mid)
    att_s = jnp.einsum('blc,bmc->blm', q, k,
                       preferred_element_type=f32)                # (1, Li, Li)
    sc_s = softmax_last(att_s)
    out_s = jnp.einsum('blm,bmc->blc', sc_s, v,
                       preferred_element_type=f32)                # (1, Li, mid)
    i_feat = gam_ref[0, 1] * out_s + h2
    i_out = conv3_bn_relu(i_feat, w4_ref, b4_ref)                 # (1, Li, Cout)

    # ------------------ write both branches into the concatenated output -----
    o_ref[:, 0:lt, :] = t_out.astype(o_ref.dtype)
    o_ref[:, lt:lt + li, :] = i_out.astype(o_ref.dtype)


# ---------------------------------------------------------------------------
# One-time parameter preparation (hoisted out of the hot path)
# ---------------------------------------------------------------------------
def prepare_params(params):
    """Fold BN (eval) into conv weights, stack the 3 conv taps into a single
    (Ci, 3*Co) matrix, transpose 1x1-conv weights channels-last, and reshape
    biases/gammas so the forward pass is exactly one pallas_call."""
    f32 = jnp.float32

    def fold_conv(w, bn):
        scale, shift = bn
        wf = w * scale[:, None, None]                    # (Co, Ci, 3)
        w_t = jnp.transpose(wf, (2, 1, 0))               # (3, Ci, Co)
        stacked = jnp.concatenate([w_t[0], w_t[1], w_t[2]], axis=1)  # (Ci, 3*Co)
        return stacked.astype(f32), shift.reshape(1, 1, -1).astype(f32)

    p = {}
    p['w1'], p['b1'] = fold_conv(params['conv1_w'], params['bn1'])
    p['w2'], p['b2'] = fold_conv(params['conv2_w'], params['bn2'])
    p['w3'], p['b3'] = fold_conv(params['conv3_w'], params['bn3'])
    p['w4'], p['b4'] = fold_conv(params['conv4_w'], params['bn4'])
    p['wq'] = params['sp_wq'].T.astype(f32)              # (mid, c8)
    p['bq'] = params['sp_bq'].reshape(1, 1, -1).astype(f32)
    p['wk'] = params['sp_wk'].T.astype(f32)
    p['bk'] = params['sp_bk'].reshape(1, 1, -1).astype(f32)
    p['wv'] = params['sp_wv'].T.astype(f32)              # (mid, mid)
    p['bv'] = params['sp_bv'].reshape(1, 1, -1).astype(f32)
    p['gammas'] = jnp.stack([params['cp_gamma'], params['sp_gamma']]
                            ).reshape(1, 2).astype(f32)
    return p


# ---------------------------------------------------------------------------
# Forward: a single pallas_call, grid over the batch dimension
# ---------------------------------------------------------------------------
def miss_modality_align(prep, text_embeds, image_embeds):
    B, Lt, Cin = text_embeds.shape
    Bi, Li, Cin_i = image_embeds.shape
    assert B == Bi and Cin == Cin_i
    Cout = prep['b3'].shape[-1]

    def param_spec(arr):
        n = arr.ndim
        # constant index_map -> block never changes -> stays resident in VMEM
        return pl.BlockSpec(tuple(arr.shape), lambda b, n=n: (0,) * n)

    order = ['w1', 'b1', 'w3', 'b3', 'w2', 'b2',
             'wq', 'bq', 'wk', 'bk', 'wv', 'bv', 'w4', 'b4']
    param_args = [prep[n] for n in order]

    return pl.pallas_call(
        _mma_fused_kernel,
        out_shape=jax.ShapeDtypeStruct((B, Lt + Li, Cout), text_embeds.dtype),
        grid=(B,),
        in_specs=([pl.BlockSpec(memory_space=pltpu.MemorySpace.SMEM),   # gammas
                   pl.BlockSpec((1, Lt, Cin), lambda b: (b, 0, 0)),
                   pl.BlockSpec((1, Li, Cin), lambda b: (b, 0, 0))]
                  + [param_spec(a) for a in param_args]),
        out_specs=pl.BlockSpec((1, Lt + Li, Cout), lambda b: (b, 0, 0)),
        compiler_params=pltpu.CompilerParams(
            dimension_semantics=("parallel",)),
    )(prep['gammas'], text_embeds, image_embeds, *param_args)


# ---------------------------------------------------------------------------
# Raw parameters (PyTorch-like init, BN eval-folded)
# ---------------------------------------------------------------------------
def init_params(key, in_channels, out_channels):
    mid = in_channels // 4
    c8 = mid // 8
    ks = jax.random.split(key, 16)

    def conv_w(k, co, ci, kw):
        return jax.random.normal(k, (co, ci, kw), jnp.float32) * 0.1

    def bn(k, c):
        k1, k2, k3, k4 = jax.random.split(k, 4)
        weight = 1.0 + 0.1 * jax.random.normal(k1, (c,), jnp.float32)
        bias = 0.1 * jax.random.normal(k2, (c,), jnp.float32)
        mean = 0.1 * jax.random.normal(k3, (c,), jnp.float32)
        var = 0.5 + jax.random.uniform(k4, (c,), jnp.float32)
        scale = weight / jnp.sqrt(var + 1e-5)
        shift = bias - mean * scale
        return scale, shift

    p = {}
    p['conv1_w'] = conv_w(ks[0], mid, in_channels, 3)
    p['bn1'] = bn(ks[1], mid)
    p['conv2_w'] = conv_w(ks[2], mid, in_channels, 3)
    p['bn2'] = bn(ks[3], mid)
    p['conv3_w'] = conv_w(ks[4], out_channels, mid, 3)
    p['bn3'] = bn(ks[5], out_channels)
    p['conv4_w'] = conv_w(ks[6], out_channels, mid, 3)
    p['bn4'] = bn(ks[7], out_channels)
    # SpaceProjection q/k/v 1x1 convs stored as dense (C_out, C_in) matrices.
    p['sp_wq'] = jax.random.normal(ks[8], (c8, mid), jnp.float32) * 0.1
    p['sp_bq'] = jax.random.normal(ks[9], (c8,), jnp.float32) * 0.1
    p['sp_wk'] = jax.random.normal(ks[10], (c8, mid), jnp.float32) * 0.1
    p['sp_bk'] = jax.random.normal(ks[11], (c8,), jnp.float32) * 0.1
    p['sp_wv'] = jax.random.normal(ks[12], (mid, mid), jnp.float32) * 0.1
    p['sp_bv'] = jax.random.normal(ks[13], (mid,), jnp.float32) * 0.1
    p['cp_gamma'] = jnp.float32(0.5)   # PyTorch init is 0; nonzero to exercise path
    p['sp_gamma'] = jnp.float32(0.7)
    return p


# ---------------------------------------------------------------------------
# Pure-JAX reference (channels-first, mirrors the PyTorch forward exactly)
# ---------------------------------------------------------------------------
def _ref_conv_bn_relu(x, w, scale, shift):
    B, C_in, L = x.shape
    xp = jnp.pad(x, ((0, 0), (0, 0), (1, 1)))
    y = sum(jnp.einsum('oi,bil->bol', w[:, :, k], xp[:, :, k:k + L]) for k in range(3))
    y = y * scale[None, :, None] + shift[None, :, None]
    return jnp.maximum(y, 0.0)


def _ref_channel_proj(x, gamma):
    att = jnp.einsum('bcl,bdl->bcd', x, x)
    score = jax.nn.softmax(att, axis=-1)
    out = jnp.einsum('bcd,bdl->bcl', score, x)
    return gamma * out + x


def _ref_space_proj(x, wq, bq, wk, bk, wv, bv, gamma):
    q = jnp.einsum('oc,bcl->bol', wq, x) + bq[None, :, None]
    k = jnp.einsum('oc,bcl->bol', wk, x) + bk[None, :, None]
    v = jnp.einsum('oc,bcl->bol', wv, x) + bv[None, :, None]
    att = jnp.einsum('bcl,bcm->blm', q, k)
    score = jax.nn.softmax(att, axis=-1)
    out = jnp.einsum('bcm,blm->bcl', v, score)
    return gamma * out + x


def ref_forward(params, text_embeds, image_embeds):
    t = jnp.transpose(text_embeds, (0, 2, 1))
    feat1 = _ref_conv_bn_relu(t, params['conv1_w'], *params['bn1'])
    text_feat = _ref_channel_proj(feat1, params['cp_gamma'])
    text_conv = jnp.transpose(
        _ref_conv_bn_relu(text_feat, params['conv3_w'], *params['bn3']), (0, 2, 1))
    im = jnp.transpose(image_embeds, (0, 2, 1))
    feat2 = _ref_conv_bn_relu(im, params['conv2_w'], *params['bn2'])
    image_feat = _ref_space_proj(feat2, params['sp_wq'], params['sp_bq'],
                                 params['sp_wk'], params['sp_bk'],
                                 params['sp_wv'], params['sp_bv'],
                                 params['sp_gamma'])
    image_conv = jnp.transpose(
        _ref_conv_bn_relu(image_feat, params['conv4_w'], *params['bn4']), (0, 2, 1))
    return jnp.concatenate([text_conv, image_conv], axis=1)


if __name__ == "__main__":
    B, L_text, L_img = 2, 8, 16
    in_channels, out_channels = 32, 16          # middle = 8, middle // 8 = 1

    key = jax.random.PRNGKey(0)
    k_t, k_i, k_p = jax.random.split(key, 3)
    text_embeds = jax.random.normal(k_t, (B, L_text, in_channels), jnp.float32)
    image_embeds = jax.random.normal(k_i, (B, L_img, in_channels), jnp.float32)
    params = init_params(k_p, in_channels, out_channels)
    prep = prepare_params(params)               # one-time, outside the hot path

    fwd = jax.jit(miss_modality_align)
    out = jax.block_until_ready(fwd(prep, text_embeds, image_embeds))
    ref = ref_forward(params, text_embeds, image_embeds)

    assert out.shape == (B, L_text + L_img, out_channels), out.shape
    max_err = float(jnp.max(jnp.abs(out - ref)))
    # tolerance covers the approximate-reciprocal softmax normalization
    assert jnp.allclose(out, ref, atol=5e-3, rtol=5e-3), max_err
    print("KERNEL_OK")
</pallas_src>

<mosaic_0001>
module attributes {stable_mosaic.version = 11 : i64} {
  func.func @_mma_fused_kernel(%arg0: i32, %arg1: memref<1x2xf32, #tpu.memory_space<smem>>, %arg2: memref<1x8x32xf32, #tpu.memory_space<vmem>>, %arg3: memref<1x16x32xf32, #tpu.memory_space<vmem>>, %arg4: memref<32x24xf32, #tpu.memory_space<vmem>>, %arg5: memref<1x1x8xf32, #tpu.memory_space<vmem>>, %arg6: memref<8x48xf32, #tpu.memory_space<vmem>>, %arg7: memref<1x1x16xf32, #tpu.memory_space<vmem>>, %arg8: memref<32x24xf32, #tpu.memory_space<vmem>>, %arg9: memref<1x1x8xf32, #tpu.memory_space<vmem>>, %arg10: memref<8x1xf32, #tpu.memory_space<vmem>>, %arg11: memref<1x1x1xf32, #tpu.memory_space<vmem>>, %arg12: memref<8x1xf32, #tpu.memory_space<vmem>>, %arg13: memref<1x1x1xf32, #tpu.memory_space<vmem>>, %arg14: memref<8x8xf32, #tpu.memory_space<vmem>>, %arg15: memref<1x1x8xf32, #tpu.memory_space<vmem>>, %arg16: memref<8x48xf32, #tpu.memory_space<vmem>>, %arg17: memref<1x1x16xf32, #tpu.memory_space<vmem>>, %arg18: memref<1x24x16xf32, #tpu.memory_space<vmem>>) attributes {dimension_semantics = [#tpu.dimension_semantics<parallel>], iteration_bounds = array<i64: 2>, scalar_prefetch = 0 : i64, scratch_operands = 0 : i64, tpu.core_type = #tpu.core_type<tc>, window_params = [{transform_indices = @transform_0, window_bounds = array<i64: 1, 2>}, {transform_indices = @transform_1, window_bounds = array<i64: 1, 8, 32>}, {transform_indices = @transform_2, window_bounds = array<i64: 1, 16, 32>}, {pipeline_mode = #tpu.pipeline_mode<synchronous>, transform_indices = @transform_3, window_bounds = array<i64: 32, 24>}, {pipeline_mode = #tpu.pipeline_mode<synchronous>, transform_indices = @transform_4, window_bounds = array<i64: 1, 1, 8>}, {pipeline_mode = #tpu.pipeline_mode<synchronous>, transform_indices = @transform_5, window_bounds = array<i64: 8, 48>}, {pipeline_mode = #tpu.pipeline_mode<synchronous>, transform_indices = @transform_6, window_bounds = array<i64: 1, 1, 16>}, {pipeline_mode = #tpu.pipeline_mode<synchronous>, transform_indices = @transform_7, window_bounds = array<i64: 32, 24>}, {pipeline_mode = #tpu.pipeline_mode<synchronous>, transform_indices = @transform_8, window_bounds = array<i64: 1, 1, 8>}, {pipeline_mode = #tpu.pipeline_mode<synchronous>, transform_indices = @transform_9, window_bounds = array<i64: 8, 1>}, {pipeline_mode = #tpu.pipeline_mode<synchronous>, transform_indices = @transform_10, window_bounds = array<i64: 1, 1, 1>}, {pipeline_mode = #tpu.pipeline_mode<synchronous>, transform_indices = @transform_11, window_bounds = array<i64: 8, 1>}, {pipeline_mode = #tpu.pipeline_mode<synchronous>, transform_indices = @transform_12, window_bounds = array<i64: 1, 1, 1>}, {pipeline_mode = #tpu.pipeline_mode<synchronous>, transform_indices = @transform_13, window_bounds = array<i64: 8, 8>}, {pipeline_mode = #tpu.pipeline_mode<synchronous>, transform_indices = @transform_14, window_bounds = array<i64: 1, 1, 8>}, {pipeline_mode = #tpu.pipeline_mode<synchronous>, transform_indices = @transform_15, window_bounds = array<i64: 8, 48>}, {pipeline_mode = #tpu.pipeline_mode<synchronous>, transform_indices = @transform_16, window_bounds = array<i64: 1, 1, 16>}, {transform_indices = @transform_17, window_bounds = array<i64: 1, 24, 16>}]} {
    %c0 = arith.constant 0 : index
    %c0_0 = arith.constant 0 : index
    %c0_1 = arith.constant 0 : index
    %0 = vector.load %arg2[%c0, %c0_0, %c0_1] : memref<1x8x32xf32, #tpu.memory_space<vmem>>, vector<1x8x32xf32>
    %1 = vector.shape_cast %0 : vector<1x8x32xf32> to vector<8x32xf32>
    %c0_2 = arith.constant 0 : index
    %c0_3 = arith.constant 0 : index
    %2 = vector.load %arg4[%c0_2, %c0_3] : memref<32x24xf32, #tpu.memory_space<vmem>>, vector<32x24xf32>
    %cst = arith.constant dense<0.000000e+00> : vector<8x24xf32>
    %3 = tpu.matmul %1, %2, %cst {dimension_numbers = #tpu.dot_dimension_numbers<[1], [0], [0], [1], [0, 0, 1, 1], [], []>} : vector<8x32xf32>, vector<32x24xf32>, vector<8x24xf32> -> vector<8x24xf32>
    %4 = vector.shape_cast %3 : vector<8x24xf32> to vector<1x8x24xf32>
    %5 = vector.extract_strided_slice %4 {offsets = [0, 0, 0], sizes = [1, 8, 8], strides = [1, 1, 1]} : vector<1x8x24xf32> to vector<1x8x8xf32>
    %6 = vector.extract_strided_slice %4 {offsets = [0, 0, 8], sizes = [1, 8, 8], strides = [1, 1, 1]} : vector<1x8x24xf32> to vector<1x8x8xf32>
    %7 = vector.extract_strided_slice %4 {offsets = [0, 0, 16], sizes = [1, 8, 8], strides = [1, 1, 1]} : vector<1x8x24xf32> to vector<1x8x8xf32>
    %cst_4 = arith.constant 0.000000e+00 : f32
    %8 = vector.broadcast %cst_4 : f32 to vector<1x1x8xf32>
    %9 = vector.extract_strided_slice %5 {offsets = [0, 0, 0], sizes = [1, 7, 8], strides = [1, 1, 1]} : vector<1x8x8xf32> to vector<1x7x8xf32>
    %10 = tpu.concatenate %8, %9 in 1 : vector<1x1x8xf32>, vector<1x7x8xf32> -> vector<1x8x8xf32>
    %11 = arith.addf %10, %6 : vector<1x8x8xf32>
    %12 = vector.extract_strided_slice %7 {offsets = [0, 1, 0], sizes = [1, 7, 8], strides = [1, 1, 1]} : vector<1x8x8xf32> to vector<1x7x8xf32>
    %13 = tpu.concatenate %12, %8 in 1 : vector<1x7x8xf32>, vector<1x1x8xf32> -> vector<1x8x8xf32>
    %14 = arith.addf %11, %13 : vector<1x8x8xf32>
    %c0_5 = arith.constant 0 : index
    %c0_6 = arith.constant 0 : index
    %c0_7 = arith.constant 0 : index
    %15 = vector.load %arg5[%c0_5, %c0_6, %c0_7] : memref<1x1x8xf32, #tpu.memory_space<vmem>>, vector<1x1x8xf32>
    %16 = vector.broadcast %15 : vector<1x1x8xf32> to vector<1x8x8xf32>
    %17 = arith.addf %14, %16 : vector<1x8x8xf32>
    %cst_8 = arith.constant 0.000000e+00 : f32
    %18 = vector.broadcast %cst_8 : f32 to vector<1x8x8xf32>
    %19 = arith.maximumf %17, %18 : vector<1x8x8xf32>
    %20 = tpu.transpose %19, [0, 2, 1] : vector<1x8x8xf32> -> vector<1x8x8xf32>
    "tpu.trace_start"() <{level = 10 : i32, message = "bcl,bdl->bcd"}> : () -> ()
    %cst_9 = arith.constant dense<0.000000e+00> : vector<1x8x8xf32>
    %21 = tpu.matmul %20, %20, %cst_9 {dimension_numbers = #tpu.dot_dimension_numbers<[2], [2], [1], [1], [0, 0, 0, 1, 1, 1], [0], [0]>} : vector<1x8x8xf32>, vector<1x8x8xf32>, vector<1x8x8xf32> -> vector<1x8x8xf32>
    "tpu.trace_stop"() : () -> ()
    %cst_10 = arith.constant dense<0xFF800000> : vector<1x8xf32>
    %22 = vector.multi_reduction <maximumf>, %21, %cst_10 [2] : vector<1x8x8xf32> to vector<1x8xf32>
    %23 = vector.shape_cast %22 : vector<1x8xf32> to vector<1x8x1xf32>
    %24 = vector.broadcast %23 : vector<1x8x1xf32> to vector<1x8x8xf32>
    %25 = arith.subf %21, %24 : vector<1x8x8xf32>
    %26 = math.exp %25 : vector<1x8x8xf32>
    %cst_11 = arith.constant dense<0.000000e+00> : vector<1x8xf32>
    %27 = vector.multi_reduction <add>, %26, %cst_11 [2] : vector<1x8x8xf32> to vector<1x8xf32>
    %28 = vector.shape_cast %27 : vector<1x8xf32> to vector<1x8x1xf32>
    %29 = tpu.reciprocal %28 {approx = true} : vector<1x8x1xf32> -> vector<1x8x1xf32>
    %30 = vector.broadcast %29 : vector<1x8x1xf32> to vector<1x8x8xf32>
    %31 = arith.mulf %26, %30 : vector<1x8x8xf32>
    "tpu.trace_start"() <{level = 10 : i32, message = "bld,bcd->blc"}> : () -> ()
    %cst_12 = arith.constant dense<0.000000e+00> : vector<1x8x8xf32>
    %32 = tpu.matmul %19, %31, %cst_12 {dimension_numbers = #tpu.dot_dimension_numbers<[2], [2], [1], [1], [0, 0, 0, 1, 1, 1], [0], [0]>} : vector<1x8x8xf32>, vector<1x8x8xf32>, vector<1x8x8xf32> -> vector<1x8x8xf32>
    "tpu.trace_stop"() : () -> ()
    %c0_13 = arith.constant 0 : index
    %c0_14 = arith.constant 0 : index
    %33 = memref.load %arg1[%c0_13, %c0_14] : memref<1x2xf32, #tpu.memory_space<smem>>
    %34 = vector.broadcast %33 : f32 to vector<1x8x8xf32>
    %35 = arith.mulf %34, %32 : vector<1x8x8xf32>
    %36 = arith.addf %35, %19 : vector<1x8x8xf32>
    %37 = vector.shape_cast %36 : vector<1x8x8xf32> to vector<8x8xf32>
    %c0_15 = arith.constant 0 : index
    %c0_16 = arith.constant 0 : index
    %38 = vector.load %arg6[%c0_15, %c0_16] : memref<8x48xf32, #tpu.memory_space<vmem>>, vector<8x48xf32>
    %cst_17 = arith.constant dense<0.000000e+00> : vector<8x48xf32>
    %39 = tpu.matmul %37, %38, %cst_17 {dimension_numbers = #tpu.dot_dimension_numbers<[1], [0], [0], [1], [0, 0, 1, 1], [], []>} : vector<8x8xf32>, vector<8x48xf32>, vector<8x48xf32> -> vector<8x48xf32>
    %40 = vector.shape_cast %39 : vector<8x48xf32> to vector<1x8x48xf32>
    %41 = vector.extract_strided_slice %40 {offsets = [0, 0, 0], sizes = [1, 8, 16], strides = [1, 1, 1]} : vector<1x8x48xf32> to vector<1x8x16xf32>
    %42 = vector.extract_strided_slice %40 {offsets = [0, 0, 16], sizes = [1, 8, 16], strides = [1, 1, 1]} : vector<1x8x48xf32> to vector<1x8x16xf32>
    %43 = vector.extract_strided_slice %40 {offsets = [0, 0, 32], sizes = [1, 8, 16], strides = [1, 1, 1]} : vector<1x8x48xf32> to vector<1x8x16xf32>
    %cst_18 = arith.constant 0.000000e+00 : f32
    %44 = vector.broadcast %cst_18 : f32 to vector<1x1x16xf32>
    %45 = vector.extract_strided_slice %41 {offsets = [0, 0, 0], sizes = [1, 7, 16], strides = [1, 1, 1]} : vector<1x8x16xf32> to vector<1x7x16xf32>
    %46 = tpu.concatenate %44, %45 in 1 : vector<1x1x16xf32>, vector<1x7x16xf32> -> vector<1x8x16xf32>
    %47 = arith.addf %46, %42 : vector<1x8x16xf32>
    %48 = vector.extract_strided_slice %43 {offsets = [0, 1, 0], sizes = [1, 7, 16], strides = [1, 1, 1]} : vector<1x8x16xf32> to vector<1x7x16xf32>
    %49 = tpu.concatenate %48, %44 in 1 : vector<1x7x16xf32>, vector<1x1x16xf32> -> vector<1x8x16xf32>
    %50 = arith.addf %47, %49 : vector<1x8x16xf32>
    %c0_19 = arith.constant 0 : index
    %c0_20 = arith.constant 0 : index
    %c0_21 = arith.constant 0 : index
    %51 = vector.load %arg7[%c0_19, %c0_20, %c0_21] : memref<1x1x16xf32, #tpu.memory_space<vmem>>, vector<1x1x16xf32>
    %52 = vector.broadcast %51 : vector<1x1x16xf32> to vector<1x8x16xf32>
    %53 = arith.addf %50, %52 : vector<1x8x16xf32>
    %cst_22 = arith.constant 0.000000e+00 : f32
    %54 = vector.broadcast %cst_22 : f32 to vector<1x8x16xf32>
    %55 = arith.maximumf %53, %54 : vector<1x8x16xf32>
    %c0_23 = arith.constant 0 : index
    %c0_24 = arith.constant 0 : index
    %c0_25 = arith.constant 0 : index
    %56 = vector.load %arg3[%c0_23, %c0_24, %c0_25] : memref<1x16x32xf32, #tpu.memory_space<vmem>>, vector<1x16x32xf32>
    %57 = vector.shape_cast %56 : vector<1x16x32xf32> to vector<16x32xf32>
    %c0_26 = arith.constant 0 : index
    %c0_27 = arith.constant 0 : index
    %58 = vector.load %arg8[%c0_26, %c0_27] : memref<32x24xf32, #tpu.memory_space<vmem>>, vector<32x24xf32>
    %cst_28 = arith.constant dense<0.000000e+00> : vector<16x24xf32>
    %59 = tpu.matmul %57, %58, %cst_28 {dimension_numbers = #tpu.dot_dimension_numbers<[1], [0], [0], [1], [0, 0, 1, 1], [], []>} : vector<16x32xf32>, vector<32x24xf32>, vector<16x24xf32> -> vector<16x24xf32>
    %60 = vector.shape_cast %59 : vector<16x24xf32> to vector<1x16x24xf32>
    %61 = vector.extract_strided_slice %60 {offsets = [0, 0, 0], sizes = [1, 16, 8], strides = [1, 1, 1]} : vector<1x16x24xf32> to vector<1x16x8xf32>
    %62 = vector.extract_strided_slice %60 {offsets = [0, 0, 8], sizes = [1, 16, 8], strides = [1, 1, 1]} : vector<1x16x24xf32> to vector<1x16x8xf32>
    %63 = vector.extract_strided_slice %60 {offsets = [0, 0, 16], sizes = [1, 16, 8], strides = [1, 1, 1]} : vector<1x16x24xf32> to vector<1x16x8xf32>
    %cst_29 = arith.constant 0.000000e+00 : f32
    %64 = vector.broadcast %cst_29 : f32 to vector<1x1x8xf32>
    %65 = vector.extract_strided_slice %61 {offsets = [0, 0, 0], sizes = [1, 15, 8], strides = [1, 1, 1]} : vector<1x16x8xf32> to vector<1x15x8xf32>
    %66 = tpu.concatenate %64, %65 in 1 : vector<1x1x8xf32>, vector<1x15x8xf32> -> vector<1x16x8xf32>
    %67 = arith.addf %66, %62 : vector<1x16x8xf32>
    %68 = vector.extract_strided_slice %63 {offsets = [0, 1, 0], sizes = [1, 15, 8], strides = [1, 1, 1]} : vector<1x16x8xf32> to vector<1x15x8xf32>
    %69 = tpu.concatenate %68, %64 in 1 : vector<1x15x8xf32>, vector<1x1x8xf32> -> vector<1x16x8xf32>
    %70 = arith.addf %67, %69 : vector<1x16x8xf32>
    %c0_30 = arith.constant 0 : index
    %c0_31 = arith.constant 0 : index
    %c0_32 = arith.constant 0 : index
    %71 = vector.load %arg9[%c0_30, %c0_31, %c0_32] : memref<1x1x8xf32, #tpu.memory_space<vmem>>, vector<1x1x8xf32>
    %72 = vector.broadcast %71 : vector<1x1x8xf32> to vector<1x16x8xf32>
    %73 = arith.addf %70, %72 : vector<1x16x8xf32>
    %cst_33 = arith.constant 0.000000e+00 : f32
    %74 = vector.broadcast %cst_33 : f32 to vector<1x16x8xf32>
    %75 = arith.maximumf %73, %74 : vector<1x16x8xf32>
    %76 = vector.shape_cast %75 : vector<1x16x8xf32> to vector<16x8xf32>
    %c0_34 = arith.constant 0 : index
    %c0_35 = arith.constant 0 : index
    %77 = vector.load %arg10[%c0_34, %c0_35] : memref<8x1xf32, #tpu.memory_space<vmem>>, vector<8x1xf32>
    %cst_36 = arith.constant dense<0.000000e+00> : vector<16x1xf32>
    %78 = tpu.matmul %76, %77, %cst_36 {dimension_numbers = #tpu.dot_dimension_numbers<[1], [0], [0], [1], [0, 0, 1, 1], [], []>} : vector<16x8xf32>, vector<8x1xf32>, vector<16x1xf32> -> vector<16x1xf32>
    %79 = vector.shape_cast %78 : vector<16x1xf32> to vector<1x16x1xf32>
    %c0_37 = arith.constant 0 : index
    %c0_38 = arith.constant 0 : index
    %c0_39 = arith.constant 0 : index
    %80 = vector.load %arg11[%c0_37, %c0_38, %c0_39] : memref<1x1x1xf32, #tpu.memory_space<vmem>>, vector<1x1x1xf32>
    %81 = vector.broadcast %80 : vector<1x1x1xf32> to vector<1x16x1xf32>
    %82 = arith.addf %79, %81 : vector<1x16x1xf32>
    %83 = vector.shape_cast %75 : vector<1x16x8xf32> to vector<16x8xf32>
    %c0_40 = arith.constant 0 : index
    %c0_41 = arith.constant 0 : index
    %84 = vector.load %arg12[%c0_40, %c0_41] : memref<8x1xf32, #tpu.memory_space<vmem>>, vector<8x1xf32>
    %cst_42 = arith.constant dense<0.000000e+00> : vector<16x1xf32>
    %85 = tpu.matmul %83, %84, %cst_42 {dimension_numbers = #tpu.dot_dimension_numbers<[1], [0], [0], [1], [0, 0, 1, 1], [], []>} : vector<16x8xf32>, vector<8x1xf32>, vector<16x1xf32> -> vector<16x1xf32>
    %86 = vector.shape_cast %85 : vector<16x1xf32> to vector<1x16x1xf32>
    %c0_43 = arith.constant 0 : index
    %c0_44 = arith.constant 0 : index
    %c0_45 = arith.constant 0 : index
    %87 = vector.load %arg13[%c0_43, %c0_44, %c0_45] : memref<1x1x1xf32, #tpu.memory_space<vmem>>, vector<1x1x1xf32>
    %88 = vector.broadcast %87 : vector<1x1x1xf32> to vector<1x16x1xf32>
    %89 = arith.addf %86, %88 : vector<1x16x1xf32>
    %90 = vector.shape_cast %75 : vector<1x16x8xf32> to vector<16x8xf32>
    %c0_46 = arith.constant 0 : index
    %c0_47 = arith.constant 0 : index
    %91 = vector.load %arg14[%c0_46, %c0_47] : memref<8x8xf32, #tpu.memory_space<vmem>>, vector<8x8xf32>
    %cst_48 = arith.constant dense<0.000000e+00> : vector<16x8xf32>
    %92 = tpu.matmul %90, %91, %cst_48 {dimension_numbers = #tpu.dot_dimension_numbers<[1], [0], [0], [1], [0, 0, 1, 1], [], []>} : vector<16x8xf32>, vector<8x8xf32>, vector<16x8xf32> -> vector<16x8xf32>
    %93 = vector.shape_cast %92 : vector<16x8xf32> to vector<1x16x8xf32>
    %c0_49 = arith.constant 0 : index
    %c0_50 = arith.constant 0 : index
    %c0_51 = arith.constant 0 : index
    %94 = vector.load %arg15[%c0_49, %c0_50, %c0_51] : memref<1x1x8xf32, #tpu.memory_space<vmem>>, vector<1x1x8xf32>
    %95 = vector.broadcast %94 : vector<1x1x8xf32> to vector<1x16x8xf32>
    %96 = arith.addf %93, %95 : vector<1x16x8xf32>
    "tpu.trace_start"() <{level = 10 : i32, message = "blc,bmc->blm"}> : () -> ()
    %cst_52 = arith.constant dense<0.000000e+00> : vector<1x16x16xf32>
    %97 = tpu.matmul %82, %89, %cst_52 {dimension_numbers = #tpu.dot_dimension_numbers<[2], [2], [1], [1], [0, 0, 0, 1, 1, 1], [0], [0]>} : vector<1x16x1xf32>, vector<1x16x1xf32>, vector<1x16x16xf32> -> vector<1x16x16xf32>
    "tpu.trace_stop"() : () -> ()
    %cst_53 = arith.constant dense<0xFF800000> : vector<1x16xf32>
    %98 = vector.multi_reduction <maximumf>, %97, %cst_53 [2] : vector<1x16x16xf32> to vector<1x16xf32>
    %99 = vector.shape_cast %98 : vector<1x16xf32> to vector<1x16x1xf32>
    %100 = vector.broadcast %99 : vector<1x16x1xf32> to vector<1x16x16xf32>
    %101 = arith.subf %97, %100 : vector<1x16x16xf32>
    %102 = math.exp %101 : vector<1x16x16xf32>
    %cst_54 = arith.constant dense<0.000000e+00> : vector<1x16xf32>
    %103 = vector.multi_reduction <add>, %102, %cst_54 [2] : vector<1x16x16xf32> to vector<1x16xf32>
    %104 = vector.shape_cast %103 : vector<1x16xf32> to vector<1x16x1xf32>
    %105 = tpu.reciprocal %104 {approx = true} : vector<1x16x1xf32> -> vector<1x16x1xf32>
    %106 = vector.broadcast %105 : vector<1x16x1xf32> to vector<1x16x16xf32>
    %107 = arith.mulf %102, %106 : vector<1x16x16xf32>
    "tpu.trace_start"() <{level = 10 : i32, message = "blm,bmc->blc"}> : () -> ()
    %cst_55 = arith.constant dense<0.000000e+00> : vector<1x16x8xf32>
    %108 = tpu.matmul %107, %96, %cst_55 {dimension_numbers = #tpu.dot_dimension_numbers<[2], [1], [1], [2], [0, 0, 0, 1, 1, 2], [0], [0]>} : vector<1x16x16xf32>, vector<1x16x8xf32>, vector<1x16x8xf32> -> vector<1x16x8xf32>
    "tpu.trace_stop"() : () -> ()
    %c0_56 = arith.constant 0 : index
    %c1 = arith.constant 1 : index
    %109 = memref.load %arg1[%c0_56, %c1] : memref<1x2xf32, #tpu.memory_space<smem>>
    %110 = vector.broadcast %109 : f32 to vector<1x16x8xf32>
    %111 = arith.mulf %110, %108 : vector<1x16x8xf32>
    %112 = arith.addf %111, %75 : vector<1x16x8xf32>
    %113 = vector.shape_cast %112 : vector<1x16x8xf32> to vector<16x8xf32>
    %c0_57 = arith.constant 0 : index
    %c0_58 = arith.constant 0 : index
    %114 = vector.load %arg16[%c0_57, %c0_58] : memref<8x48xf32, #tpu.memory_space<vmem>>, vector<8x48xf32>
    %cst_59 = arith.constant dense<0.000000e+00> : vector<16x48xf32>
    %115 = tpu.matmul %113, %114, %cst_59 {dimension_numbers = #tpu.dot_dimension_numbers<[1], [0], [0], [1], [0, 0, 1, 1], [], []>} : vector<16x8xf32>, vector<8x48xf32>, vector<16x48xf32> -> vector<16x48xf32>
    %116 = vector.shape_cast %115 : vector<16x48xf32> to vector<1x16x48xf32>
    %117 = vector.extract_strided_slice %116 {offsets = [0, 0, 0], sizes = [1, 16, 16], strides = [1, 1, 1]} : vector<1x16x48xf32> to vector<1x16x16xf32>
    %118 = vector.extract_strided_slice %116 {offsets = [0, 0, 16], sizes = [1, 16, 16], strides = [1, 1, 1]} : vector<1x16x48xf32> to vector<1x16x16xf32>
    %119 = vector.extract_strided_slice %116 {offsets = [0, 0, 32], sizes = [1, 16, 16], strides = [1, 1, 1]} : vector<1x16x48xf32> to vector<1x16x16xf32>
    %cst_60 = arith.constant 0.000000e+00 : f32
    %120 = vector.broadcast %cst_60 : f32 to vector<1x1x16xf32>
    %121 = vector.extract_strided_slice %117 {offsets = [0, 0, 0], sizes = [1, 15, 16], strides = [1, 1, 1]} : vector<1x16x16xf32> to vector<1x15x16xf32>
    %122 = tpu.concatenate %120, %121 in 1 : vector<1x1x16xf32>, vector<1x15x16xf32> -> vector<1x16x16xf32>
    %123 = arith.addf %122, %118 : vector<1x16x16xf32>
    %124 = vector.extract_strided_slice %119 {offsets = [0, 1, 0], sizes = [1, 15, 16], strides = [1, 1, 1]} : vector<1x16x16xf32> to vector<1x15x16xf32>
    %125 = tpu.concatenate %124, %120 in 1 : vector<1x15x16xf32>, vector<1x1x16xf32> -> vector<1x16x16xf32>
    %126 = arith.addf %123, %125 : vector<1x16x16xf32>
    %c0_61 = arith.constant 0 : index
    %c0_62 = arith.constant 0 : index
    %c0_63 = arith.constant 0 : index
    %127 = vector.load %arg17[%c0_61, %c0_62, %c0_63] : memref<1x1x16xf32, #tpu.memory_space<vmem>>, vector<1x1x16xf32>
    %128 = vector.broadcast %127 : vector<1x1x16xf32> to vector<1x16x16xf32>
    %129 = arith.addf %126, %128 : vector<1x16x16xf32>
    %cst_64 = arith.constant 0.000000e+00 : f32
    %130 = vector.broadcast %cst_64 : f32 to vector<1x16x16xf32>
    %131 = arith.maximumf %129, %130 : vector<1x16x16xf32>
    %c0_65 = arith.constant 0 : index
    %c0_66 = arith.constant 0 : index
    %c0_67 = arith.constant 0 : index
    %132 = vector.load %arg18[%c0_65, %c0_66, %c0_67] : memref<1x24x16xf32, #tpu.memory_space<vmem>>, vector<1x8x16xf32>
    tpu.vector_store %arg18[%c0_65, %c0_66, %c0_67], %55 {strides = array<i32>} : memref<1x24x16xf32, #tpu.memory_space<vmem>>, vector<1x8x16xf32>,
    %c0_68 = arith.constant 0 : index
    %c8 = arith.constant 8 : index
    %c0_69 = arith.constant 0 : index
    %133 = vector.load %arg18[%c0_68, %c8, %c0_69] : memref<1x24x16xf32, #tpu.memory_space<vmem>>, vector<1x16x16xf32>
    tpu.vector_store %arg18[%c0_68, %c8, %c0_69], %131 {strides = array<i32>} : memref<1x24x16xf32, #tpu.memory_space<vmem>>, vector<1x16x16xf32>,
    return
  }
  func.func @transform_0(%arg0: i32) -> (i32, i32) {
    %c0_i32 = arith.constant 0 : i32
    %c0_i32_0 = arith.constant 0 : i32
    %c0_i32_1 = arith.constant 0 : i32
    return %c0_i32, %c0_i32_0 : i32, i32
  }
  func.func @transform_1(%arg0: i32) -> (i32, i32, i32) {
    %c0_i32 = arith.constant 0 : i32
    %c0_i32_0 = arith.constant 0 : i32
    %c0_i32_1 = arith.constant 0 : i32
    return %arg0, %c0_i32, %c0_i32_0 : i32, i32, i32
  }
  func.func @transform_2(%arg0: i32) -> (i32, i32, i32) {
    %c0_i32 = arith.constant 0 : i32
    %c0_i32_0 = arith.constant 0 : i32
    %c0_i32_1 = arith.constant 0 : i32
    return %arg0, %c0_i32, %c0_i32_0 : i32, i32, i32
  }
  func.func @transform_3(%arg0: i32) -> (i32, i32) {
    %c0_i32 = arith.constant 0 : i32
    %c0_i32_0 = arith.constant 0 : i32
    %c0_i32_1 = arith.constant 0 : i32
    return %c0_i32, %c0_i32_0 : i32, i32
  }
  func.func @transform_4(%arg0: i32) -> (i32, i32, i32) {
    %c0_i32 = arith.constant 0 : i32
    %c0_i32_0 = arith.constant 0 : i32
    %c0_i32_1 = arith.constant 0 : i32
    %c0_i32_2 = arith.constant 0 : i32
    return %c0_i32, %c0_i32_0, %c0_i32_1 : i32, i32, i32
  }
  func.func @transform_5(%arg0: i32) -> (i32, i32) {
    %c0_i32 = arith.constant 0 : i32
    %c0_i32_0 = arith.constant 0 : i32
    %c0_i32_1 = arith.constant 0 : i32
    return %c0_i32, %c0_i32_0 : i32, i32
  }
  func.func @transform_6(%arg0: i32) -> (i32, i32, i32) {
    %c0_i32 = arith.constant 0 : i32
    %c0_i32_0 = arith.constant 0 : i32
    %c0_i32_1 = arith.constant 0 : i32
    %c0_i32_2 = arith.constant 0 : i32
    return %c0_i32, %c0_i32_0, %c0_i32_1 : i32, i32, i32
  }
  func.func @transform_7(%arg0: i32) -> (i32, i32) {
    %c0_i32 = arith.constant 0 : i32
    %c0_i32_0 = arith.constant 0 : i32
    %c0_i32_1 = arith.constant 0 : i32
    return %c0_i32, %c0_i32_0 : i32, i32
  }
  func.func @transform_8(%arg0: i32) -> (i32, i32, i32) {
    %c0_i32 = arith.constant 0 : i32
    %c0_i32_0 = arith.constant 0 : i32
    %c0_i32_1 = arith.constant 0 : i32
    %c0_i32_2 = arith.constant 0 : i32
    return %c0_i32, %c0_i32_0, %c0_i32_1 : i32, i32, i32
  }
  func.func @transform_9(%arg0: i32) -> (i32, i32) {
    %c0_i32 = arith.constant 0 : i32
    %c0_i32_0 = arith.constant 0 : i32
    %c0_i32_1 = arith.constant 0 : i32
    return %c0_i32, %c0_i32_0 : i32, i32
  }
  func.func @transform_10(%arg0: i32) -> (i32, i32, i32) {
    %c0_i32 = arith.constant 0 : i32
    %c0_i32_0 = arith.constant 0 : i32
    %c0_i32_1 = arith.constant 0 : i32
    %c0_i32_2 = arith.constant 0 : i32
    return %c0_i32, %c0_i32_0, %c0_i32_1 : i32, i32, i32
  }
  func.func @transform_11(%arg0: i32) -> (i32, i32) {
    %c0_i32 = arith.constant 0 : i32
    %c0_i32_0 = arith.constant 0 : i32
    %c0_i32_1 = arith.constant 0 : i32
    return %c0_i32, %c0_i32_0 : i32, i32
  }
  func.func @transform_12(%arg0: i32) -> (i32, i32, i32) {
    %c0_i32 = arith.constant 0 : i32
    %c0_i32_0 = arith.constant 0 : i32
    %c0_i32_1 = arith.constant 0 : i32
    %c0_i32_2 = arith.constant 0 : i32
    return %c0_i32, %c0_i32_0, %c0_i32_1 : i32, i32, i32
  }
  func.func @transform_13(%arg0: i32) -> (i32, i32) {
    %c0_i32 = arith.constant 0 : i32
    %c0_i32_0 = arith.constant 0 : i32
    %c0_i32_1 = arith.constant 0 : i32
    return %c0_i32, %c0_i32_0 : i32, i32
  }
  func.func @transform_14(%arg0: i32) -> (i32, i32, i32) {
    %c0_i32 = arith.constant 0 : i32
    %c0_i32_0 = arith.constant 0 : i32
    %c0_i32_1 = arith.constant 0 : i32
    %c0_i32_2 = arith.constant 0 : i32
    return %c0_i32, %c0_i32_0, %c0_i32_1 : i32, i32, i32
  }
  func.func @transform_15(%arg0: i32) -> (i32, i32) {
    %c0_i32 = arith.constant 0 : i32
    %c0_i32_0 = arith.constant 0 : i32
    %c0_i32_1 = arith.constant 0 : i32
    return %c0_i32, %c0_i32_0 : i32, i32
  }
  func.func @transform_16(%arg0: i32) -> (i32, i32, i32) {
    %c0_i32 = arith.constant 0 : i32
    %c0_i32_0 = arith.constant 0 : i32
    %c0_i32_1 = arith.constant 0 : i32
    %c0_i32_2 = arith.constant 0 : i32
    return %c0_i32, %c0_i32_0, %c0_i32_1 : i32, i32, i32
  }
  func.func @transform_17(%arg0: i32) -> (i32, i32, i32) {
    %c0_i32 = arith.constant 0 : i32
    %c0_i32_0 = arith.constant 0 : i32
    %c0_i32_1 = arith.constant 0 : i32
    return %arg0, %c0_i32, %c0_i32_0 : i32, i32, i32
  }
}

</mosaic_0001>

<bundles_post_ra>
// kernel: miss_modality_align.1
= control target key start
LH: loop header
LB: loop body
LE: loop exit
PB: predicated region body
PF: predicated region fallthrough
CT: control target
= control target key end

     0   :  { %s1556_s0 = inlined_call_operand.vmem [shape: f32[1,2], index: 0, kind: input, shape index: {}]   ;;  %s1557_s1 = inlined_call_operand.vmem [shape: f32[2,8,32], index: 1, kind: input, shape index: {}]   ;;  %s1558_s2 = inlined_call_operand.vmem [shape: f32[2,16,32], index: 2, kind: input, shape index: {}]   ;;  %s1559_s3 = inlined_call_operand.vmem [shape: f32[32,24], index: 3, kind: input, shape index: {}]   ;;  %s1560_s4 = inlined_call_operand.vmem [shape: f32[1,1,8], index: 4, kind: input, shape index: {}]   ;;  %s1561_s5 = inlined_call_operand.vmem [shape: f32[8,48], index: 5, kind: input, shape index: {}]   ;;  %s1562_s6 = inlined_call_operand.vmem [shape: f32[1,1,16], index: 6, kind: input, shape index: {}]   ;;  %s1563_s7 = inlined_call_operand.vmem [shape: f32[32,24], index: 7, kind: input, shape index: {}]   ;;  %s1564_s8 = inlined_call_operand.vmem [shape: f32[1,1,8], index: 8, kind: input, shape index: {}]   ;;  %s1565_s9 = inlined_call_operand.vmem [shape: f32[8,1], index: 9, kind: input, shape index: {}]   ;;  %s1566_s10 = inlined_call_operand.<no memory space> [shape: f32[1,1,1], index: 10, kind: input, shape index: {}]   ;;  %s1567_s11 = inlined_call_operand.vmem [shape: f32[8,1], index: 11, kind: input, shape index: {}]   ;;  %s1568_s13 = inlined_call_operand.vmem [shape: f32[8,8], index: 13, kind: input, shape index: {}]   ;;  %s1569_s14 = inlined_call_operand.vmem [shape: f32[1,1,8], index: 14, kind: input, shape index: {}]   ;;  %s1570_s15 = inlined_call_operand.vmem [shape: f32[8,48], index: 15, kind: input, shape index: {}]   ;;  %s1571_s16 = inlined_call_operand.vmem [shape: f32[1,1,16], index: 16, kind: input, shape index: {}]   ;;  %s1572_s17 = inlined_call_operand.vmem [shape: f32[2,24,16], index: 17, kind: output, shape index: {}]   ;;  %s1573_s12 = inlined_call_operand.<no memory space> [shape: f32[1,1,1], index: 12, kind: input, shape index: {}]  }
   0x1   :  { %1574 = sst [smem:[#allocation7_spill]] %s1556_s0  ;;  %v22_v0 = vstv %s1566_s10  ;;  %v24_v1 = vstv %s1573_s12 }
   0x2   :  { %1575 = sst [smem:[#allocation8_spill]] %s1557_s1  ;;  %23 = vst [vmem:[#allocation2] sm:$0x1] %v22_v0 }
   0x3   :  { %25 = vst [vmem:[#allocation3] sm:$0x1] %v24_v1 }
   0x4   :  { %26 = vsyncpa [#allocation5], 0  ;;  %s1401_s28 = smov 0  }
   0x5 LB: > { %s1193_s29 = sadd.s32 4294967295, %s1299_s28   ;;  %p1195_p0 = scmp.ge.s32.totalorder %s1299_s28, 1  ;;  %s1299_s28 = sphi %s1401_s28, %s32_s28  }
   0x6   : > { %p430_p1 = scmp.lt.s32.totalorder %s1299_s28, 3  ;;  %s1576_s30 = sld [smem:[#allocation7_spill]] }
   0x7   : > { %p1240_p3 = scmp.eq.s32.totalorder %s1193_s29, 0  ;;  %s1301_s18 = smov [#allocation4]  }
   0x8   : > { %p431_p2 = pnand %p1195_p0, %p430_p1 }
   0xa   : > { %p1236_p4 = pneg %p431_p2  ;;  %512 = sbr.rel (%p431_p2) target bundleno = 2180 (0x884), region = 88 }
   0xc   : > { %s442_s12 = sshll.u32 %s1576_s30, 4  ;;  %p1237_p5 = pnand %p1240_p3, %p1236_p4  ;;  %s443_s12 = int_to_ptr.vmem [resolvable:$true] %s442_s12 }
   0xe   : > { %1239 = dma.vmem_to_smem (!%p1237_p5), %s443_s12, 16, %s1301_s18, [#allocation5]  }
   0xf   : > { %1294 = dma.done.wait (%p1240_p3), [#allocation5], 16  }
  0x10   : > { %1296 = vsyncadd (%p1240_p3), [#allocation5], 4294967280 }
  0x11   : > { %519 = sfence }
  0x12   : > { %v588_v2 = vld [vmem:[%s1559_s3 + $0x18] sm:$0xff]  ;;  %v587_v3 = vld [vmem:[%s1559_s3 + $0x10] sm:$0xff]  ;;  %p570_p6 = scmp.lt.s32.totalorder %s1193_s29, 1  ;;  %v586_v4 = vld [vmem:[%s1559_s3 + $0x8] sm:$0xff]  ;;  %s1577_s0 = sld [smem:[#allocation8_spill]]  ;;  %vm589_vm0 = vcmask 261120  }
  0x13   : > { %605 = vmatpush.msra.mxu0 %v588_v2  ;;  %v585_v5 = vld [vmem:[%s1559_s3] sm:$0xff]  ;;  %s1302_s12 = smov 120   ;;  %vm624_vm1 = vcmask 1046528   ;;  %s1303_s18 = smov 112   ;;  %vm616_vm2 = vcmask 1040384   ;;  %vm669_vm3 = vcmask 64512  }
  0x14   : > { %s1579_s29 = smov (!%p570_p6, %s1193_s29), 1  ;;  %v1255_v14 = vld [vmem:[%s1560_s4] ss:$0 sm:$0xff]  ;;  %v785_v31 = vld [vmem:[%s1563_s7 + $0x18] sm:$0xff]  ;;  %v784_v32 = vld [vmem:[%s1563_s7 + $0x10] sm:$0xff]  ;;  %s1304_s22 = smov 96  }
  0x15   : > { %606 = vmatpush.msra.mxu0 %v587_v3  ;;  %s1200_s26 = sshll.u32 %s1579_s29, 3  ;;  %v734_v30 = vld [vmem:[%s1561_s5] sm:$0xff]  ;;  %v783_v33 = vld [vmem:[%s1563_s7 + $0x8] sm:$0xff]  ;;  %s1229_s19 = sshll.u32 %s1579_s29, 4  ;;  %vm949_vm4 = vcmask 7168   ;;  %vm985_vm5 = vcmask 130048  }
  0x16   : > { %753 = vmatpush.msra.mxu3 %v734_v30  ;;  %v782_v34 = vld [vmem:[%s1563_s7] sm:$0xff]  ;;  %s578_s21 = scalar_lea.vmem %s1558_s2, %s1229_s19 }
  0x17   : > { %607 = vmatpush.msra.mxu0 %v586_v4  ;;  %v780_v39 = vld [vmem:[%s578_s21] sm:$0xff]  ;;  %v781_v40 = vld [vmem:[%s578_s21 + $0x8] sm:$0xff]  ;;  %s1231_s21 = smul.u32 24, %s1579_s29 }
  0x18   : > { %s573_s30 = scalar_lea.vmem %s1577_s0, %s1200_s26  ;;  %804 = vmatpush.msrb.mxu3 %v785_v31  ;;  %v853_v50 = vld [vmem:[%s1565_s9] sm:$0xff] }
  0x19   : > { %v584_v6 = vld [vmem:[%s573_s30] sm:$0xff]  ;;  %608 = vmatpush.msra.mxu0 %v585_v5  ;;  %s730_s30 = sld [smem:[#allocation4]]  ;;  %875 = vmatpush.msra.mxu1 %v853_v50  ;;  %s1525_s25 = scalar_lea.vmem %s1572_s17, %s1231_s21 }
  0x1a   : > { %1204 = vmatmul.msk.f32.vlgmr.msra.gmra.mxu0 %vm589_vm0, %v584_v6  ;;  %805 = vmatpush.msrb.mxu3 %v784_v32  ;;  %v919_v51 = vld [vmem:[%s1568_s13] sm:$0xff] }
  0x1b   : > { %v889_v52 = vld [vmem:[%s1567_s11] sm:$0xff] }
  0x1c   : > { %806 = vmatpush.msrb.mxu3 %v783_v33  ;;  %905 = vmatpush.msrb.mxu1 %v889_v52  ;;  %v1256_v58 = vld [vmem:[%s1564_s8] ss:$0 sm:$0xff] }
  0x1d   : > { %v1043_v50 = vld [vmem:[%s1570_s15] sm:$0xff] }
  0x1e   : > { %807 = vmatpush.msrb.mxu3 %v782_v34 }
  0x1f   : > { %v731_v35 = vstv %s730_s30 }
  0x97   : > { %v610_v7 = vpop.f32.mrf.mxu0 }
  0x98   : > { %618 = vrot.lane.b32.xlu0 %v610_v7, %s1302_s12  ;;  %v622_v8 = vrot.slane %v610_v7, 1  ;;  %v614_v11 = vrot.slane %v610_v7, 7 }
  0x9a   : > { %v625_v9 = vsel %vm624_vm1, %v622_v8, 0.0  ;;  %v617_v12 = vsel %vm616_vm2, 0.0, %v614_v11  ;;  %v1258_v8 = vld [vmem:[%s1569_s14] ss:$0 sm:$0xff] }
  0xa0   : > { %627 = vrot.lane.b32.xlu0 %v625_v9, %s1303_s18 }
 0x10a   : > { %v619_v10 = vpop.permute.xlu0 %618 }
 0x10b   : > { %v621_v13 = vadd.f32 %v619_v10, %v617_v12  ;;  %v1259_v12 = vld [vmem:[#allocation3] ss:$0 sm:$0xff] }
 0x112   : > { %v628_v15 = vpop.permute.xlu0 %627 }
 0x113   : > { %v630_v16 = vadd.f32 %v628_v15, %v621_v13 }
 0x115   : > { %v635_v17 = vadd.f32 %v1255_v14, %v630_v16 }
 0x117   : > { %v636_v18 = vmax.f32 %v635_v17, 0.0  ;;  %v1257_v17 = vld [vmem:[#allocation2] ss:$0 sm:$0xff] }
 0x119   : > { %637 = vxpose.xlu1.b32.start.end [1/1] (short) (narrow) %v636_v18, 8 }
 0x1bd   : > { %v653_v19 = vpop.trf.xlu1 }
 0x1be   : > { %1205 = vmatpush.xpose.msk.msrb.mxu0 %vm669_vm3, %v653_v19 }
 0x1c1   : > { %1206 = vmatmul.msk.f32.vlgmr.msrb.gmra.mxu0 %vm669_vm3, %v653_v19 }
 0x1c2   : > { %935 = vmatpush.msra.mxu0 %v919_v51 }
 0x23e   : > { %v690_v20 = vpop.f32.mrf.mxu0 }
 0x23f   : > { %v693_v21 = vsel %vm669_vm3, %v690_v20, -inf }
 0x240   : > { %694 = vmax.xlane.f32.xlu1 %v693_v21 }
 0x2b3   : > { %v695_v22 = vpop.xlane.xlu1 %694 }
 0x2b4   : > { %v696_v23 = vsub.f32 %v690_v20, %v695_v22 }
 0x2b6   : > { %v697_v24 = vmul.f32 1.442695, %v696_v23 }
 0x2b8   : > { %1262 = vpow2.f32 %v697_v24 }
 0x2be   : > { %v1263_v25 = vpop.eup %1262 }
 0x2bf   : > { %v699_v26 = vsel %vm669_vm3, %v1263_v25, 0.0 }
 0x2c0   : > { %700 = vadd.xlane.f32.xlu2 %v699_v26 }
 0x333   : > { %v701_v27 = vpop.xlane.xlu2 %700 }
 0x334   : > { %1264 = vrcp.f32 %v701_v27 }
 0x33a   : > { %v1265_v28 = vpop.eup %1264 }
 0x33b   : > { %v703_v29 = vmul.f32 %v1265_v28, %v1263_v25 }
 0x33d   : > { %1207 = vmatpush.xpose.msk.msra.mxu2 %vm669_vm3, %v703_v29 }
 0x340   : > { %1208 = vmatmul.msk.f32.vlgmr.msra.gmra.mxu2 %vm669_vm3, %v636_v18 }
 0x341   : > { %1230 = vmatpush.msrb.mxu2 %v889_v52 }
 0x343   : > { %1065 = vmatpush.msra.mxu2 %v1043_v50 }
 0x3c3   : > { %v727_v36 = vpop.f32.mrf.mxu2 }
 0x3c4   : > { %v732_v37 = vmul.f32 %v731_v35, %v727_v36 }
 0x3c6   : > { %v733_v38 = vadd.f32 %v732_v37, %v636_v18 }
 0x3c8   : > { %1209 = vmatmul.msk.f32.vlgmr.msra.gmra.mxu3 %vm669_vm3, %v733_v38  ;;  %v1260_v38 = vld [vmem:[%s1562_s6] ss:$0 sm:$0xff] }
 0x3d0   : > { %1210 = vmatmul.msk.f32.vlgmr.msrb.gmra.mxu3 %vm589_vm0, %v780_v39 }
 0x3d8   : > { %1211 = vmatmul.msk.f32.gmra.mxu3 %vm589_vm0, %v781_v40 }
 0x44b   : > { %v1466_v41 = vpop.f32.mrf.mxu3 }
 0x44c   : > { %v766_v42 = vrot.slane %v1466_v41, 1  ;;  %v759_v35 = vrot.slane %v1466_v41, 7 }
 0x44e   : > { %v768_v43 = vsel %vm624_vm1, %v766_v42, 0.0  ;;  %v761_v37 = vsel %vm616_vm2, 0.0, %v759_v35 }
 0x44f   : > { %770 = vrot.lane.b32.xlu1 %v768_v43, %s1304_s22 }
 0x453   : > { %v809_v44 = vpop.f32.mrf.mxu3 }
 0x454   : > { %823 = vrot.lane.b32.xlu2 %v809_v44, %s1302_s12  ;;  %v831_v47 = vrot.slane %v809_v44, 1  ;;  %v817_v54 = vrot.slane %v809_v44, 7 }
 0x456   : > { %v822_v56 = vsel %vm616_vm2, 0.0, %v817_v54 }
 0x45b   : > { %v812_v45 = vpop.f32.mrf.mxu3 }
 0x45c   : > { %825 = vrot.lane.b32.xlu0 %v812_v45, %s1302_s12  ;;  %v832_v46 = vrot.slane %v812_v45, 1  ;;  %v818_v61 = vrot.slane %v812_v45, 7  ;;  %s1224_s12 = sld [smem:[#allocation4 + $0x1]] }
 0x45e   : > { %v833_v48 = vsel %vm624_vm1, %v831_v47, %v832_v46  ;;  %v835_v49 = vsel %vm624_vm1, %v832_v46, 0.0  ;;  %v819_v0 = vsel %vm616_vm2, %v817_v54, %v818_v61 }
 0x462   : > { %v1038_v51 = vstv %s1224_s12 }
 0x464   : > { %837 = vrot.lane.b32.xlu0 %v833_v48, %s1303_s18 }
 0x46c   : > { %839 = vrot.lane.b32.xlu0 %v835_v49, %s1303_s18 }
 0x4ae   : > { %v824_v55 = vpop.permute.xlu2 %823 }
 0x4af   : > { %v829_v57 = vadd.f32 %v824_v55, %v822_v56 }
 0x4c1   : > { %v771_v40 = vpop.permute.xlu1 %770 }
 0x4ce   : > { %v826_v53 = vpop.permute.xlu0 %825 }
 0x4cf   : > { %v830_v1 = vadd.f32 %v826_v53, %v819_v0 }
 0x4d6   : > { %v838_v59 = vpop.permute.xlu0 %837 }
 0x4d7   : > { %v843_v60 = vadd.f32 %v838_v59, %v829_v57 }
 0x4d9   : > { %v849_v62 = vadd.f32 %v1256_v58, %v843_v60 }
 0x4db   : > { %v1490_v63 = vmax.f32 %v849_v62, 0.0 }
 0x4dd   : > { %1212 = vmatmul.msk.f32.vlgmr.msra.gmra.mxu1 %vm669_vm3, %v1490_v63  ;;  %1216 = vmatmul.msk.f32.vlgmr.msra.gmra.mxu0 %vm669_vm3, %v1490_v63 }
 0x4de   : > { %v840_v2 = vpop.permute.xlu0 %839 }
 0x4df   : > { %v844_v3 = vadd.f32 %v840_v2, %v830_v1 }
 0x4e1   : > { %v850_v4 = vadd.f32 %v1256_v58, %v844_v3 }
 0x4e3   : > { %v1497_v5 = vmax.f32 %v850_v4, 0.0 }
 0x4e5   : > { %1213 = vmatmul.msk.f32.gmra.mxu1 %vm669_vm3, %v1497_v5  ;;  %1215 = vmatmul.msk.f32.vlgmr.msrb.gmra.mxu2 %vm669_vm3, %v1497_v5 }
 0x4e6   : > { %1217 = vmatmul.msk.f32.gmra.mxu0 %vm669_vm3, %v1497_v5 }
 0x4ed   : > { %1214 = vmatmul.msk.f32.vlgmr.msrb.gmra.mxu1 %vm669_vm3, %v1490_v63 }
 0x55a   : > { %v877_v6 = vpop.f32.mrf.mxu1  ;;  %v937_v7 = vpop.f32.mrf.mxu0 }
 0x55b   : > { %v947_v13 = vadd.f32 %v1258_v8, %v937_v7  ;;  %v887_v19 = vadd.f32 %v1257_v17, %v877_v6 }
 0x562   : > { %v880_v9 = vpop.f32.mrf.mxu1 }
 0x563   : > { %v940_v10 = vpop.f32.mrf.mxu0  ;;  %v888_v20 = vadd.f32 %v1257_v17, %v880_v9 }
 0x564   : > { %v948_v11 = vadd.f32 %v1258_v8, %v940_v10 }
 0x566   : > { %1028 = vmatpush.msra.mxu1 %v948_v11 }
 0x568   : > { %1029 = vmatpush.msra.mxu1 %v947_v13  ;;  %v910_v14 = vpop.f32.mrf.mxu2 }
 0x569   : > { %v918_v15 = vadd.f32 %v1259_v12, %v910_v14 }
 0x56a   : > { %v907_v16 = vpop.f32.mrf.mxu1 }
 0x56b   : > { %1218 = vmatpush.xpose.msk.msra.mxu3 %vm949_vm4, %v918_v15  ;;  %v917_v18 = vadd.f32 %v1259_v12, %v907_v16 }
 0x56f   : > { %1219 = vmatpush.xpose.msk.msra.mxu3 %vm949_vm4, %v917_v18 }
 0x572   : > { %1220 = vmatmul.msk.f32.vlgmr.msra.gmra.mxu3 %vm949_vm4, %v887_v19 }
 0x57a   : > { %1221 = vmatmul.msk.f32.gmra.mxu3 %vm949_vm4, %v888_v20 }
 0x5f5   : > { %v979_v21 = vpop.f32.mrf.mxu3 }
 0x5f6   : > { %v986_v22 = vsel %vm985_vm5, %v979_v21, -inf }
 0x5f7   : > { %987 = vmax.xlane.f32.xlu2 %v986_v22 }
 0x5fd   : > { %v982_v23 = vpop.f32.mrf.mxu3 }
 0x5fe   : > { %v989_v24 = vsel %vm985_vm5, %v982_v23, -inf }
 0x5ff   : > { %990 = vmax.xlane.f32.xlu0 %v989_v24 }
 0x613   : > { %762 = vrot.lane.b32.xlu0 %v1466_v41, %s1303_s18 }
 0x66a   : > { %v988_v25 = vpop.xlane.xlu2 %987 }
 0x66b   : > { %v992_v26 = vsub.f32 %v979_v21, %v988_v25 }
 0x66d   : > { %v994_v27 = vmul.f32 1.442695, %v992_v26 }
 0x66f   : > { %1266 = vpow2.f32 %v994_v27 }
 0x672   : > { %v991_v28 = vpop.xlane.xlu0 %990 }
 0x673   : > { %v993_v29 = vsub.f32 %v982_v23, %v991_v28 }
 0x675   : > { %v1267_v30 = vpop.eup %1266  ;;  %v996_v31 = vmul.f32 1.442695, %v993_v29 }
 0x676   : > { %v998_v32 = vsel %vm985_vm5, %v1267_v30, 0.0 }
 0x677   : > { %1268 = vpow2.f32 %v996_v31  ;;  %999 = vadd.xlane.f32.xlu2 %v998_v32 }
 0x67d   : > { %v1269_v33 = vpop.eup %1268 }
 0x67e   : > { %v1001_v34 = vsel %vm985_vm5, %v1269_v33, 0.0 }
 0x67f   : > { %1002 = vadd.xlane.f32.xlu2 %v1001_v34 }
 0x685   : > { %v763_v36 = vpop.permute.xlu0 %762 }
 0x686   : > { %v765_v39 = vadd.f32 %v763_v36, %v761_v37 }
 0x688   : > { %v773_v42 = vadd.f32 %v771_v40, %v765_v39 }
 0x68a   : > { %v778_v43 = vadd.f32 %v1260_v38, %v773_v42 }
 0x68c   : > { %v779_v44 = vmax.f32 %v778_v43, 0.0 }
 0x68e   : > { %1111 = vst.msk [vmem:[%s1525_s25] sm:$0xff] %vm985_vm5, %v779_v44 }
 0x6ea   : > { %v1000_v41 = vpop.xlane.xlu2 %999 }
 0x6eb   : > { %1270 = vrcp.f32 %v1000_v41 }
 0x6f1   : > { %v1271_v45 = vpop.eup %1270 }
 0x6f2   : > { %v1006_v46 = vmul.f32 %v1271_v45, %v1267_v30  ;;  %v1003_v47 = vpop.xlane.xlu2 %1002 }
 0x6f3   : > { %1272 = vrcp.f32 %v1003_v47 }
 0x6f4   : > { %1222 = vmatmul.msk.f32.vlgmr.msra.gmra.mxu1 %vm985_vm5, %v1006_v46 }
 0x6f9   : > { %v1273_v48 = vpop.eup %1272 }
 0x6fa   : > { %v1007_v49 = vmul.f32 %v1273_v48, %v1269_v33 }
 0x6fc   : > { %1223 = vmatmul.msk.f32.gmra.mxu1 %vm985_vm5, %v1007_v49 }
 0x771   : > { %v1031_v52 = vpop.f32.mrf.mxu1 }
 0x772   : > { %v1039_v53 = vmul.f32 %v1038_v51, %v1031_v52 }
 0x774   : > { %v1041_v54 = vadd.f32 %v1039_v53, %v1490_v63 }
 0x776   : > { %1225 = vmatmul.msk.f32.vlgmr.msra.gmra.mxu2 %vm669_vm3, %v1041_v54 }
 0x779   : > { %v1034_v55 = vpop.f32.mrf.mxu1 }
 0x77a   : > { %v1040_v56 = vmul.f32 %v1038_v51, %v1034_v55 }
 0x77c   : > { %v1042_v57 = vadd.f32 %v1040_v56, %v1497_v5  ;;  %v1261_v5 = vld [vmem:[%s1571_s16] ss:$0 sm:$0xff] }
 0x77e   : > { %1226 = vmatmul.msk.f32.gmra.mxu2 %vm669_vm3, %v1042_v57 }
 0x7f9   : > { %v1067_v58 = vpop.f32.mrf.mxu2 }
 0x7fa   : > { %1081 = vrot.lane.b32.xlu2 %v1067_v58, %s1303_s18  ;;  %v1075_v62 = vrot.slane %v1067_v58, 7  ;;  %v1089_v1 = vrot.slane %v1067_v58, 1 }
 0x7fc   : > { %v1080_v10 = vsel %vm616_vm2, 0.0, %v1075_v62 }
 0x801   : > { %v1070_v59 = vpop.f32.mrf.mxu2 }
 0x802   : > { %v1076_v60 = vrot.slane %v1070_v59, 7  ;;  %v1090_v61 = vrot.slane %v1070_v59, 1  ;;  %1083 = vrot.lane.b32.xlu0 %v1070_v59, %s1303_s18 }
 0x804   : > { %v1093_v0 = vsel %vm624_vm1, %v1090_v61, 0.0  ;;  %v1077_v63 = vsel %vm616_vm2, %v1075_v62, %v1076_v60  ;;  %v1091_v2 = vsel %vm624_vm1, %v1089_v1, %v1090_v61 }
 0x805   : > { %1097 = vrot.lane.b32.xlu2 %v1093_v0, %s1304_s22 }
 0x80a   : > { %1095 = vrot.lane.b32.xlu0 %v1091_v2, %s1304_s22 }
 0x854   : > { %v1082_v3 = vpop.permute.xlu2 %1081 }
 0x855   : > { %v1087_v11 = vadd.f32 %v1082_v3, %v1080_v10 }
 0x85f   : > { %v1098_v7 = vpop.permute.xlu2 %1097 }
 0x874   : > { %v1084_v4 = vpop.permute.xlu0 %1083 }
 0x875   : > { %v1088_v6 = vadd.f32 %v1084_v4, %v1077_v63 }
 0x877   : > { %v1102_v8 = vadd.f32 %v1098_v7, %v1088_v6 }
 0x879   : > { %v1108_v9 = vadd.f32 %v1261_v5, %v1102_v8 }
 0x87b   : > { %v1110_v12 = vmax.f32 %v1108_v9, 0.0 }
 0x87c   : > { %v1096_v13 = vpop.permute.xlu0 %1095 }
 0x87d   : > { %1113 = vst.msk [vmem:[%s1525_s25 + $0x10] sm:$0xff] %vm985_vm5, %v1110_v12  ;;  %v1101_v14 = vadd.f32 %v1096_v13, %v1087_v11 }
 0x87f   : > { %v1107_v15 = vadd.f32 %v1261_v5, %v1101_v14 }
 0x881   : > { %v1109_v16 = vmax.f32 %v1107_v15, 0.0 }
 0x883   : > { %1112 = vst.msk [vmem:[%s1525_s25 + $0x8] sm:$0xff] %vm985_vm5, %v1109_v16 }
 0x884 PF: > { %s32_s28 = sadd.s32 1, %s1299_s28  }
 0x885   : > { %p29_p7 = scmp.ge.s32.totalorder %s32_s28, 4  }
 0x887   :  { %31 = sbr.rel (!%p29_p7) target bundleno = 5 (0x5), region = 126 }
 0x88c   :  { %1135 = vsyncpa [#allocation5], 1 }
 0x88d   :  { %1137 = vsyncpa [#allocation5 + $0x1], 1 }

</bundles_post_ra>
